<compile_context>
chip_gen: v5e
topology: v5e:2x2
jax: 0.10.0
libtpu: 0.0.40
codegen_flags: <defaults>
</compile_context>

<pallas_src>
import jax
import jax.numpy as jnp
from jax.experimental import pallas as pl
from jax.experimental.pallas import tpu as pltpu


def _readout_kernel(x_ref, w1t_ref, b1_ref, w2_ref, b2_ref, o_ref):
    # x_ref  : (TILE_N, F)   atom tile (the only per-step HBM stream)
    # w1t_ref: (K*H, F)      all keys' Dense-1 weights, [out, in] layout
    # b1_ref : (K*H, 1)
    # w2_ref : (K, K*H)      block-diagonal Dense-2 weights, pre-scaled by std_k
    # b2_ref : (K, 1)        b2_k * std_k + mean_k
    # o_ref  : (K, TILE_N)   lane-dense per-key outputs (atoms on the lane axis)
    x = x_ref[...]

    # Dense 1: NT form (contraction on the last dim of both operands -> MXU
    # transposed-rhs path, no separate XLU transpose of the big x tile).
    h = jax.lax.dot_general(
        w1t_ref[...], x, (((1,), (1,)), ((), ())),
        preferred_element_type=jnp.float32)                      # (K*H, TILE_N)
    h = h + b1_ref[...]
    h = h * jax.lax.logistic(h)        # SiLU (PaiNN default activation), in f32
    # TODO(synk): dropout omitted (identity at inference; no train-mode RNG here)

    # Dense 2 + ScaleShift as a single MXU matmul against block-diagonal W2*std
    # (keeps the per-key reduction off the VPU/XLU, which had no slack to spare).
    out = jnp.dot(w2_ref[...], h, preferred_element_type=jnp.float32)  # (K, TILE_N)
    o_ref[...] = (out + b2_ref[...]).astype(o_ref.dtype)


def _round_up(x, m):
    return ((x + m - 1) // m) * m


def _vmem_budget_bytes():
    """Working-set budget: safe on v7x's 64 MiB VMEM as well as v5e/v6e's 128 MiB."""
    try:
        cap = pltpu.get_tpu_info().vmem_capacity_bytes
    except Exception:
        cap = 64 * 1024 * 1024
    return min(cap // 2, 24 * 1024 * 1024)


def _pick_tile_n(n, f, num_keys, hidden, x_bytes, max_tile=8192):
    """Largest 128-multiple atom tile whose pipelined footprint fits the VMEM budget."""
    kh = num_keys * hidden
    lane = 128
    budget = _vmem_budget_bytes()
    # Resident weight operands (single-buffered; sublane/lane padded layout).
    resident = (_round_up(kh, 8) * _round_up(f, lane) * x_bytes        # W1^T
                + _round_up(kh, 8) * lane * 4                          # b1
                + _round_up(num_keys, 8) * _round_up(kh, lane) * 4     # W2 blkdiag
                + 8 * lane * 4)                                        # b2
    # Per-atom-row footprint: double-buffered x tile, double-buffered output
    # tile, plus the f32 (K*H, TILE_N) intermediates of Dense-1 / Dense-2.
    per_row = (2 * _round_up(f, lane) * x_bytes
               + 2 * num_keys * 4
               + 2 * kh * 4)
    avail = max(budget - resident, per_row * 128)
    tile = (avail // per_row) // 128 * 128
    tile = max(128, min(tile, max_tile, _round_up(n, 128)))
    return int(tile)


def fuse_readout_params(params, means=None, stddevs=None):
    """Concatenate all keys' weights; fold ScaleShift into the Dense-2 params."""
    means = means or {}
    stddevs = stddevs or {}
    keys = tuple(params.keys())
    hiddens = {int(params[k]["w1"].shape[1]) for k in keys}
    if len(hiddens) != 1:
        raise ValueError(f"all output keys must share the same hidden width, got {hiddens}")
    hidden = hiddens.pop()
    num_keys = len(keys)

    w1t, b1, w2_rows, b2 = [], [], [], []
    for idx, k in enumerate(keys):
        p = params[k]
        std = jnp.asarray(stddevs.get(k, 1.0), jnp.float32)
        mean = jnp.asarray(means.get(k, 0.0), jnp.float32)
        w1t.append(p["w1"].T)                                   # (H, F)
        b1.append(p["b1"].reshape(-1, 1))                       # (H, 1)
        # Block-diagonal Dense-2 row: w2_k (std folded in) in cols k*H:(k+1)*H.
        row = p["w2"].reshape(1, -1) * std                      # (1, H)
        w2_rows.append(jnp.pad(
            row, ((0, 0), (idx * hidden, (num_keys - 1 - idx) * hidden))))
        b2.append(p["b2"].reshape(1, 1) * std + mean)           # (1, 1)
    return (keys,
            jnp.concatenate(w1t, axis=0),                       # (K*H, F)
            jnp.concatenate(b1, axis=0),                        # (K*H, 1)
            jnp.concatenate(w2_rows, axis=0),                   # (K, K*H)
            jnp.concatenate(b2, axis=0),                        # (K, 1)
            hidden)


def readout_block(s_i, params, means=None, stddevs=None, *, max_tile_n=8192):
    """ReadoutBlock.forward: dict of per-key atomwise scalars [N, 1] (no atomwise sum)."""
    keys, w1t, b1c, w2c, b2c, hidden = fuse_readout_params(params, means, stddevs)
    n, f = s_i.shape
    num_keys = len(keys)
    kh = w1t.shape[0]

    # If the caller feeds bf16 activations, keep them bf16 into the MXU
    # (halves the dominant s_i HBM read; accumulation stays f32 either way).
    w1t = w1t.astype(s_i.dtype)
    x_bytes = jnp.dtype(s_i.dtype).itemsize

    tile_n = _pick_tile_n(n, f, num_keys, hidden, x_bytes, max_tile_n)
    steps = pl.cdiv(n, tile_n)
    if steps > 1 and steps % 2:
        steps += 1            # even step count keeps both v7x TensorCores fed
    n_pad = steps * tile_n
    if n_pad != n:
        s_i = jnp.pad(s_i, ((0, n_pad - n), (0, 0)))
    grid = (steps,)

    def call(weight_mode):
        wkw = {} if weight_mode is None else {"pipeline_mode": weight_mode}
        return pl.pallas_call(
            _readout_kernel,
            out_shape=jax.ShapeDtypeStruct((num_keys, n_pad), jnp.float32),
            grid_spec=pl.GridSpec(
                grid=grid,
                in_specs=[
                    pl.BlockSpec((tile_n, f), lambda i: (i, 0)),            # s_i tile
                    pl.BlockSpec((kh, f), lambda i: (0, 0), **wkw),         # W1^T
                    pl.BlockSpec((kh, 1), lambda i: (0, 0), **wkw),         # b1
                    pl.BlockSpec((num_keys, kh), lambda i: (0, 0), **wkw),  # W2*std blkdiag
                    pl.BlockSpec((num_keys, 1), lambda i: (0, 0), **wkw),   # b2*std+mean
                ],
                out_specs=pl.BlockSpec((num_keys, tile_n), lambda i: (0, i)),
            ),
            compiler_params=pltpu.CompilerParams(
                dimension_semantics=("parallel",),
                vmem_limit_bytes=32 * 1024 * 1024),
        )(s_i, w1t, b1c, w2c, b2c)

    try:
        # Grid-invariant operands only need one pipeline buffer (halves their VMEM).
        out_t = call(pl.Buffered(1))
    except Exception:
        # Fall back to default double buffering if this lowering path rejects
        # pipeline_mode on top-level BlockSpecs.
        out_t = call(None)

    # Padded tail atoms carry SiLU(b1)-derived garbage; [:n] slices them off.
    # Back to the module's per-key [N, 1] layout (wrapper-side plumbing only).
    return {k: out_t[idx, :n].reshape(n, 1) for idx, k in enumerate(keys)}


def init_params(key, n_atom_basis, output_keys):
    """Deterministic synthetic parameters matching the module's shapes."""
    hidden = n_atom_basis // 2
    params = {}
    for i, k in enumerate(output_keys):
        k1, k2 = jax.random.split(jax.random.fold_in(key, i))
        params[k] = {
            "w1": jax.random.normal(k1, (n_atom_basis, hidden), jnp.float32) * 0.1,
            "b1": jnp.full((1, hidden), 0.01, jnp.float32),
            "w2": jax.random.normal(k2, (hidden, 1), jnp.float32) * 0.1,
            "b2": jnp.full((1, 1), 0.02, jnp.float32),
        }
    return params


def reference(s_i, params, means, stddevs):
    """Pure-JAX reference for correctness."""
    out = {}
    hp = jax.lax.Precision.HIGHEST
    for k, p in params.items():
        h = jnp.dot(s_i, p["w1"], precision=hp) + p["b1"]
        h = jax.nn.silu(h)
        o = jnp.dot(h, p["w2"], precision=hp) + p["b2"]
        out[k] = o * stddevs.get(k, 1.0) + means.get(k, 0.0)
    return out


if __name__ == "__main__":
    n_atoms = 200          # deliberately NOT a multiple of 128 (exercises padded tail)
    n_atom_basis = 32      # feature dim -> hidden = 16
    output_keys = ("energy", "gap")

    root = jax.random.PRNGKey(0)
    k_x, k_p = jax.random.split(root)

    s_i = jax.random.normal(k_x, (n_atoms, n_atom_basis), jnp.float32)
    params = init_params(k_p, n_atom_basis, output_keys)
    means = {"energy": -1.5, "gap": 0.25}
    stddevs = {"energy": 2.0, "gap": 0.5}

    results = jax.block_until_ready(readout_block(s_i, params, means, stddevs))

    ref = reference(s_i, params, means, stddevs)
    for k in output_keys:
        assert results[k].shape == (n_atoms, 1), (k, results[k].shape)
        assert jnp.allclose(results[k], ref[k], atol=1e-4, rtol=1e-4), k

    print("KERNEL_OK")
</pallas_src>

<mosaic_0001>
module attributes {stable_mosaic.version = 11 : i64} {
  func.func @_readout_kernel(%arg0: i32, %arg1: memref<256x32xf32, #tpu.memory_space<vmem>>, %arg2: memref<32x32xf32, #tpu.memory_space<vmem>>, %arg3: memref<32x1xf32, #tpu.memory_space<vmem>>, %arg4: memref<2x32xf32, #tpu.memory_space<vmem>>, %arg5: memref<2x1xf32, #tpu.memory_space<vmem>>, %arg6: memref<2x256xf32, #tpu.memory_space<vmem>>) attributes {dimension_semantics = [#tpu.dimension_semantics<parallel>], iteration_bounds = array<i64: 1>, scalar_prefetch = 0 : i64, scratch_operands = 0 : i64, tpu.core_type = #tpu.core_type<tc>, window_params = [{transform_indices = @transform_0, window_bounds = array<i64: 256, 32>}, {pipeline_mode = #tpu.pipeline_mode<synchronous>, transform_indices = @transform_1, window_bounds = array<i64: 32, 32>}, {pipeline_mode = #tpu.pipeline_mode<synchronous>, transform_indices = @transform_2, window_bounds = array<i64: 32, 1>}, {pipeline_mode = #tpu.pipeline_mode<synchronous>, transform_indices = @transform_3, window_bounds = array<i64: 2, 32>}, {pipeline_mode = #tpu.pipeline_mode<synchronous>, transform_indices = @transform_4, window_bounds = array<i64: 2, 1>}, {transform_indices = @transform_5, window_bounds = array<i64: 2, 256>}]} {
    %c0 = arith.constant 0 : index
    %c0_0 = arith.constant 0 : index
    %0 = vector.load %arg1[%c0, %c0_0] : memref<256x32xf32, #tpu.memory_space<vmem>>, vector<256x32xf32>
    %c0_1 = arith.constant 0 : index
    %c0_2 = arith.constant 0 : index
    %1 = vector.load %arg2[%c0_1, %c0_2] : memref<32x32xf32, #tpu.memory_space<vmem>>, vector<32x32xf32>
    %cst = arith.constant dense<0.000000e+00> : vector<32x256xf32>
    %2 = tpu.matmul %1, %0, %cst {dimension_numbers = #tpu.dot_dimension_numbers<[1], [1], [0], [0], [0, 0, 1, 0], [], []>} : vector<32x32xf32>, vector<256x32xf32>, vector<32x256xf32> -> vector<32x256xf32>
    %c0_3 = arith.constant 0 : index
    %c0_4 = arith.constant 0 : index
    %3 = vector.load %arg3[%c0_3, %c0_4] : memref<32x1xf32, #tpu.memory_space<vmem>>, vector<32x1xf32>
    %4 = vector.broadcast %3 : vector<32x1xf32> to vector<32x256xf32>
    %5 = arith.addf %2, %4 : vector<32x256xf32>
    %6 = arith.negf %5 : vector<32x256xf32>
    %7 = math.exp %6 : vector<32x256xf32>
    %cst_5 = arith.constant 1.000000e+00 : f32
    %8 = vector.broadcast %cst_5 : f32 to vector<32x256xf32>
    %9 = arith.addf %8, %7 : vector<32x256xf32>
    %10 = arith.divf %8, %9 : vector<32x256xf32>
    %11 = arith.mulf %5, %10 : vector<32x256xf32>
    %c0_6 = arith.constant 0 : index
    %c0_7 = arith.constant 0 : index
    %12 = vector.load %arg4[%c0_6, %c0_7] : memref<2x32xf32, #tpu.memory_space<vmem>>, vector<2x32xf32>
    %cst_8 = arith.constant dense<0.000000e+00> : vector<2x256xf32>
    %13 = tpu.matmul %12, %11, %cst_8 {dimension_numbers = #tpu.dot_dimension_numbers<[1], [0], [0], [1], [0, 0, 1, 1], [], []>} : vector<2x32xf32>, vector<32x256xf32>, vector<2x256xf32> -> vector<2x256xf32>
    %c0_9 = arith.constant 0 : index
    %c0_10 = arith.constant 0 : index
    %14 = vector.load %arg5[%c0_9, %c0_10] : memref<2x1xf32, #tpu.memory_space<vmem>>, vector<2x1xf32>
    %15 = vector.broadcast %14 : vector<2x1xf32> to vector<2x256xf32>
    %16 = arith.addf %13, %15 : vector<2x256xf32>
    %c0_11 = arith.constant 0 : index
    %c0_12 = arith.constant 0 : index
    %17 = vector.load %arg6[%c0_11, %c0_12] : memref<2x256xf32, #tpu.memory_space<vmem>>, vector<2x256xf32>
    tpu.vector_store %arg6[%c0_11, %c0_12], %16 {strides = array<i32>} : memref<2x256xf32, #tpu.memory_space<vmem>>, vector<2x256xf32>,
    return
  }
  func.func @transform_0(%arg0: i32) -> (i32, i32) {
    %c0_i32 = arith.constant 0 : i32
    %c0_i32_0 = arith.constant 0 : i32
    return %arg0, %c0_i32 : i32, i32
  }
  func.func @transform_1(%arg0: i32) -> (i32, i32) {
    %c0_i32 = arith.constant 0 : i32
    %c0_i32_0 = arith.constant 0 : i32
    %c0_i32_1 = arith.constant 0 : i32
    return %c0_i32, %c0_i32_0 : i32, i32
  }
  func.func @transform_2(%arg0: i32) -> (i32, i32) {
    %c0_i32 = arith.constant 0 : i32
    %c0_i32_0 = arith.constant 0 : i32
    %c0_i32_1 = arith.constant 0 : i32
    return %c0_i32, %c0_i32_0 : i32, i32
  }
  func.func @transform_3(%arg0: i32) -> (i32, i32) {
    %c0_i32 = arith.constant 0 : i32
    %c0_i32_0 = arith.constant 0 : i32
    %c0_i32_1 = arith.constant 0 : i32
    return %c0_i32, %c0_i32_0 : i32, i32
  }
  func.func @transform_4(%arg0: i32) -> (i32, i32) {
    %c0_i32 = arith.constant 0 : i32
    %c0_i32_0 = arith.constant 0 : i32
    %c0_i32_1 = arith.constant 0 : i32
    return %c0_i32, %c0_i32_0 : i32, i32
  }
  func.func @transform_5(%arg0: i32) -> (i32, i32) {
    %c0_i32 = arith.constant 0 : i32
    %c0_i32_0 = arith.constant 0 : i32
    return %c0_i32, %arg0 : i32, i32
  }
}

module attributes {stable_mosaic.version = 11 : i64} {
  func.func @_readout_kernel(%arg0: i32, %arg1: memref<256x32xf32, #tpu.memory_space<vmem>>, %arg2: memref<32x32xf32, #tpu.memory_space<vmem>>, %arg3: memref<32x1xf32, #tpu.memory_space<vmem>>, %arg4: memref<2x32xf32, #tpu.memory_space<vmem>>, %arg5: memref<2x1xf32, #tpu.memory_space<vmem>>, %arg6: memref<2x256xf32, #tpu.memory_space<vmem>>) attributes {dimension_semantics = [#tpu.dimension_semantics<parallel>], iteration_bounds = array<i64: 1>, scalar_prefetch = 0 : i64, scratch_operands = 0 : i64, tpu.core_type = #tpu.core_type<tc>, window_params = [{transform_indices = @transform_0, window_bounds = array<i64: 256, 32>}, {pipeline_mode = #tpu.pipeline_mode<synchronous>, transform_indices = @transform_1, window_bounds = array<i64: 32, 32>}, {pipeline_mode = #tpu.pipeline_mode<synchronous>, transform_indices = @transform_2, window_bounds = array<i64: 32, 1>}, {pipeline_mode = #tpu.pipeline_mode<synchronous>, transform_indices = @transform_3, window_bounds = array<i64: 2, 32>}, {pipeline_mode = #tpu.pipeline_mode<synchronous>, transform_indices = @transform_4, window_bounds = array<i64: 2, 1>}, {transform_indices = @transform_5, window_bounds = array<i64: 2, 256>}]} {
    %c0 = arith.constant 0 : index
    %c0_0 = arith.constant 0 : index
    %0 = vector.load %arg1[%c0, %c0_0] : memref<256x32xf32, #tpu.memory_space<vmem>>, vector<256x32xf32>
    %c0_1 = arith.constant 0 : index
    %c0_2 = arith.constant 0 : index
    %1 = vector.load %arg2[%c0_1, %c0_2] : memref<32x32xf32, #tpu.memory_space<vmem>>, vector<32x32xf32>
    %cst = arith.constant dense<0.000000e+00> : vector<32x256xf32>
    %2 = tpu.matmul %1, %0, %cst {dimension_numbers = #tpu.dot_dimension_numbers<[1], [1], [0], [0], [0, 0, 1, 0], [], []>} : vector<32x32xf32>, vector<256x32xf32>, vector<32x256xf32> -> vector<32x256xf32>
    %c0_3 = arith.constant 0 : index
    %c0_4 = arith.constant 0 : index
    %3 = vector.load %arg3[%c0_3, %c0_4] : memref<32x1xf32, #tpu.memory_space<vmem>>, vector<32x1xf32>
    %4 = vector.broadcast %3 : vector<32x1xf32> to vector<32x256xf32>
    %5 = arith.addf %2, %4 : vector<32x256xf32>
    %6 = arith.negf %5 : vector<32x256xf32>
    %7 = math.exp %6 : vector<32x256xf32>
    %cst_5 = arith.constant 1.000000e+00 : f32
    %8 = vector.broadcast %cst_5 : f32 to vector<32x256xf32>
    %9 = arith.addf %8, %7 : vector<32x256xf32>
    %10 = arith.divf %8, %9 : vector<32x256xf32>
    %11 = arith.mulf %5, %10 : vector<32x256xf32>
    %c0_6 = arith.constant 0 : index
    %c0_7 = arith.constant 0 : index
    %12 = vector.load %arg4[%c0_6, %c0_7] : memref<2x32xf32, #tpu.memory_space<vmem>>, vector<2x32xf32>
    %cst_8 = arith.constant dense<0.000000e+00> : vector<2x256xf32>
    %13 = tpu.matmul %12, %11, %cst_8 {dimension_numbers = #tpu.dot_dimension_numbers<[1], [0], [0], [1], [0, 0, 1, 1], [], []>} : vector<2x32xf32>, vector<32x256xf32>, vector<2x256xf32> -> vector<2x256xf32>
    %c0_9 = arith.constant 0 : index
    %c0_10 = arith.constant 0 : index
    %14 = vector.load %arg5[%c0_9, %c0_10] : memref<2x1xf32, #tpu.memory_space<vmem>>, vector<2x1xf32>
    %15 = vector.broadcast %14 : vector<2x1xf32> to vector<2x256xf32>
    %16 = arith.addf %13, %15 : vector<2x256xf32>
    %c0_11 = arith.constant 0 : index
    %c0_12 = arith.constant 0 : index
    %17 = vector.load %arg6[%c0_11, %c0_12] : memref<2x256xf32, #tpu.memory_space<vmem>>, vector<2x256xf32>
    tpu.vector_store %arg6[%c0_11, %c0_12], %16 {strides = array<i32>} : memref<2x256xf32, #tpu.memory_space<vmem>>, vector<2x256xf32>,
    return
  }
  func.func @transform_0(%arg0: i32) -> (i32, i32) {
    %c0_i32 = arith.constant 0 : i32
    %c0_i32_0 = arith.constant 0 : i32
    return %arg0, %c0_i32 : i32, i32
  }
  func.func @transform_1(%arg0: i32) -> (i32, i32) {
    %c0_i32 = arith.constant 0 : i32
    %c0_i32_0 = arith.constant 0 : i32
    %c0_i32_1 = arith.constant 0 : i32
    return %c0_i32, %c0_i32_0 : i32, i32
  }
  func.func @transform_2(%arg0: i32) -> (i32, i32) {
    %c0_i32 = arith.constant 0 : i32
    %c0_i32_0 = arith.constant 0 : i32
    %c0_i32_1 = arith.constant 0 : i32
    return %c0_i32, %c0_i32_0 : i32, i32
  }
  func.func @transform_3(%arg0: i32) -> (i32, i32) {
    %c0_i32 = arith.constant 0 : i32
    %c0_i32_0 = arith.constant 0 : i32
    %c0_i32_1 = arith.constant 0 : i32
    return %c0_i32, %c0_i32_0 : i32, i32
  }
  func.func @transform_4(%arg0: i32) -> (i32, i32) {
    %c0_i32 = arith.constant 0 : i32
    %c0_i32_0 = arith.constant 0 : i32
    %c0_i32_1 = arith.constant 0 : i32
    return %c0_i32, %c0_i32_0 : i32, i32
  }
  func.func @transform_5(%arg0: i32) -> (i32, i32) {
    %c0_i32 = arith.constant 0 : i32
    %c0_i32_0 = arith.constant 0 : i32
    return %c0_i32, %arg0 : i32, i32
  }
}

</mosaic_0001>

<bundles_post_ra>
// kernel: tpu_custom_call.1
= control target key start
LH: loop header
LB: loop body
LE: loop exit
PB: predicated region body
PF: predicated region fallthrough
CT: control target
= control target key end

     0   :  { %vm1034_vm0 = vcmask 261120   ;;  %s1028_s0 = inlined_call_operand.vmem [shape: f32[256,32], index: 0, kind: input, shape index: {}]   ;;  %s1029_s1 = inlined_call_operand.vmem [shape: f32[32,32], index: 1, kind: input, shape index: {}]   ;;  %s1030_s2 = inlined_call_operand.vmem [shape: f32[32,1], index: 2, kind: input, shape index: {}]   ;;  %s1031_s3 = inlined_call_operand.vmem [shape: f32[2,32], index: 3, kind: input, shape index: {}]   ;;  %s1032_s4 = inlined_call_operand.vmem [shape: f32[2,1], index: 4, kind: input, shape index: {}]   ;;  %s1033_s5 = inlined_call_operand.hbm [shape: f32[2,256], index: 5, kind: output, shape index: {}]  }
   0x1   :  { %v36_v0 = vld [vmem:[%s1028_s0 + $0x78] sm:$0xff]  ;;  %v35_v2 = vld [vmem:[%s1028_s0 + $0x70] sm:$0xff]  ;;  %v34_v4 = vld [vmem:[%s1028_s0 + $0x68] sm:$0xff] }
   0x2   :  { %v52_v1 = vld [vmem:[%s1028_s0 + $0xf8] sm:$0xff]  ;;  %481 = vmatpush.xpose.msk.msra.mxu0 %vm1034_vm0, %v36_v0  ;;  %v51_v3 = vld [vmem:[%s1028_s0 + $0xf0] sm:$0xff]  ;;  %v50_v5 = vld [vmem:[%s1028_s0 + $0xe8] sm:$0xff] }
   0x3   :  { %501 = vmatpush.xpose.msk.msra.mxu1 %vm1034_vm0, %v52_v1 }
   0x6   :  { %482 = vmatpush.xpose.msk.msra.mxu0 %vm1034_vm0, %v35_v2 }
   0x7   :  { %502 = vmatpush.xpose.msk.msra.mxu1 %vm1034_vm0, %v51_v3 }
   0x8   :  { %10 = vsyncpa [#allocation3], 0  ;;  %v33_v6 = vld [vmem:[%s1028_s0 + $0x60] sm:$0xff]  ;;  %v32_v8 = vld [vmem:[%s1028_s0 + $0x58] sm:$0xff]  ;;  %v594_v21 = vmov 0   ;;  %s595_s23 = smov [#allocation2]  }
   0x9   :  { %v49_v7 = vld [vmem:[%s1028_s0 + $0xe0] sm:$0xff]  ;;  %v48_v9 = vld [vmem:[%s1028_s0 + $0xd8] sm:$0xff]  ;;  %v31_v10 = vld [vmem:[%s1028_s0 + $0x50] sm:$0xff]  ;;  %534 = vset.pattern.permute.xlu1 %v594_v21  ;;  %533 = vset.pattern.permute.xlu0 %v594_v21  ;;  %s470_s24 = sshll.u32 %s595_s23, 4  ;;  %s472_s27 = sshll.u32 %s1033_s5, 4  ;;  %s471_s24 = int_to_ptr.vmem [resolvable:$true] %s470_s24  ;;  %s473_s27 = int_to_ptr.hbm [resolvable:$true] %s472_s27 }
   0xa   :  { %483 = vmatpush.xpose.msk.msra.mxu0 %vm1034_vm0, %v34_v4  ;;  %v47_v11 = vld [vmem:[%s1028_s0 + $0xd0] sm:$0xff]  ;;  %v30_v12 = vld [vmem:[%s1028_s0 + $0x48] sm:$0xff]  ;;  %v29_v14 = vld [vmem:[%s1028_s0 + $0x40] sm:$0xff]  ;;  %535 = vset.pattern.permute.xlu2 %v594_v21 }
   0xb   :  { %503 = vmatpush.xpose.msk.msra.mxu1 %vm1034_vm0, %v50_v5  ;;  %v46_v13 = vld [vmem:[%s1028_s0 + $0xc8] sm:$0xff]  ;;  %v45_v15 = vld [vmem:[%s1028_s0 + $0xc0] sm:$0xff]  ;;  %v28_v16 = vld [vmem:[%s1028_s0 + $0x38] sm:$0xff] }
   0xc   :  { %v44_v17 = vld [vmem:[%s1028_s0 + $0xb8] sm:$0xff]  ;;  %v58_v18 = vld [vmem:[%s1030_s2 + $0x8] sm:$0xff]  ;;  %v27_v19 = vld [vmem:[%s1028_s0 + $0x30] sm:$0xff] }
   0xd   :  { %v43_v20 = vld [vmem:[%s1028_s0 + $0xb0] sm:$0xff]  ;;  %68 = vperm.xlu1 %534, %v58_v18   ;;  %v26_v22 = vld [vmem:[%s1028_s0 + $0x28] sm:$0xff]  ;;  %v57_v24 = vld [vmem:[%s1030_s2] sm:$0xff] }
   0xe   :  { %484 = vmatpush.xpose.msk.msra.mxu0 %vm1034_vm0, %v33_v6  ;;  %v42_v23 = vld [vmem:[%s1028_s0 + $0xa8] sm:$0xff]  ;;  %v25_v25 = vld [vmem:[%s1028_s0 + $0x20] sm:$0xff]  ;;  %v24_v27 = vld [vmem:[%s1028_s0 + $0x18] sm:$0xff] }
   0xf   :  { %504 = vmatpush.xpose.msk.msra.mxu1 %vm1034_vm0, %v49_v7  ;;  %v41_v26 = vld [vmem:[%s1028_s0 + $0xa0] sm:$0xff]  ;;  %v40_v28 = vld [vmem:[%s1028_s0 + $0x98] sm:$0xff]  ;;  %v23_v30 = vld [vmem:[%s1028_s0 + $0x10] sm:$0xff] }
  0x10   :  { %v60_v29 = vld [vmem:[%s1030_s2 + $0x18] sm:$0xff]  ;;  %v39_v31 = vld [vmem:[%s1028_s0 + $0x90] sm:$0xff]  ;;  %v22_v32 = vld [vmem:[%s1028_s0 + $0x8] sm:$0xff] }
  0x11   :  { %78 = vperm.xlu0 %533, %v60_v29   ;;  %v38_v33 = vld [vmem:[%s1028_s0 + $0x88] sm:$0xff]  ;;  %v59_v34 = vld [vmem:[%s1030_s2 + $0x10] sm:$0xff]  ;;  %v21_v35 = vld [vmem:[%s1028_s0] sm:$0xff] }
  0x12   :  { %485 = vmatpush.xpose.msk.msra.mxu0 %vm1034_vm0, %v32_v8  ;;  %v37_v36 = vld [vmem:[%s1028_s0 + $0x80] sm:$0xff]  ;;  %v54_v38 = vld [vmem:[%s1029_s1 + $0x8] sm:$0xff]  ;;  %v55_v39 = vld [vmem:[%s1029_s1 + $0x10] sm:$0xff] }
  0x13   :  { %505 = vmatpush.xpose.msk.msra.mxu1 %vm1034_vm0, %v48_v9  ;;  %v53_v37 = vld [vmem:[%s1029_s1] sm:$0xff]  ;;  %v56_v40 = vld [vmem:[%s1029_s1 + $0x18] sm:$0xff] }
  0x15   :  { %63 = vperm.xlu1 %534, %v57_v24  }
  0x16   :  { %486 = vmatpush.xpose.msk.msra.mxu0 %vm1034_vm0, %v31_v10 }
  0x17   :  { %506 = vmatpush.xpose.msk.msra.mxu1 %vm1034_vm0, %v47_v11 }
  0x19   :  { %73 = vperm.xlu0 %533, %v59_v34  }
  0x1a   :  { %487 = vmatpush.xpose.msk.msra.mxu0 %vm1034_vm0, %v30_v12 }
  0x1b   :  { %507 = vmatpush.xpose.msk.msra.mxu1 %vm1034_vm0, %v46_v13 }
  0x1e   :  { %488 = vmatpush.xpose.msk.msra.mxu0 %vm1034_vm0, %v29_v14 }
  0x1f   :  { %508 = vmatpush.xpose.msk.msra.mxu1 %vm1034_vm0, %v45_v15 }
  0x22   :  { %489 = vmatpush.xpose.msk.msra.mxu0 %vm1034_vm0, %v28_v16 }
  0x23   :  { %509 = vmatpush.xpose.msk.msra.mxu1 %vm1034_vm0, %v44_v17 }
  0x26   :  { %490 = vmatpush.xpose.msk.msra.mxu0 %vm1034_vm0, %v27_v19 }
  0x27   :  { %510 = vmatpush.xpose.msk.msra.mxu1 %vm1034_vm0, %v43_v20 }
  0x2a   :  { %491 = vmatpush.xpose.msk.msra.mxu0 %vm1034_vm0, %v26_v22 }
  0x2b   :  { %511 = vmatpush.xpose.msk.msra.mxu1 %vm1034_vm0, %v42_v23  ;;  %v409_v23 = vld [vmem:[%s1032_s4] sm:$0x3] }
  0x2c   :  { %412 = vperm.xlu2 %535, %v409_v23  }
  0x2e   :  { %492 = vmatpush.xpose.msk.msra.mxu0 %vm1034_vm0, %v25_v25 }
  0x2f   :  { %512 = vmatpush.xpose.msk.msra.mxu1 %vm1034_vm0, %v41_v26 }
  0x32   :  { %493 = vmatpush.xpose.msk.msra.mxu0 %vm1034_vm0, %v24_v27 }
  0x33   :  { %513 = vmatpush.xpose.msk.msra.mxu1 %vm1034_vm0, %v40_v28 }
  0x36   :  { %494 = vmatpush.xpose.msk.msra.mxu0 %vm1034_vm0, %v23_v30 }
  0x37   :  { %514 = vmatpush.xpose.msk.msra.mxu1 %vm1034_vm0, %v39_v31 }
  0x3a   :  { %495 = vmatpush.xpose.msk.msra.mxu0 %vm1034_vm0, %v22_v32 }
  0x3b   :  { %515 = vmatpush.xpose.msk.msra.mxu1 %vm1034_vm0, %v38_v33 }
  0x3e   :  { %496 = vmatpush.xpose.msk.msra.mxu0 %vm1034_vm0, %v21_v35 }
  0x3f   :  { %516 = vmatpush.xpose.msk.msra.mxu1 %vm1034_vm0, %v37_v36 }
  0x41   :  { %497 = vmatmul.msk.f32.vlgmr.msra.gmra.mxu0 %vm1034_vm0, %v53_v37 }
  0x42   :  { %517 = vmatmul.msk.f32.vlgmr.msra.gmra.mxu1 %vm1034_vm0, %v53_v37 }
  0x49   :  { %498 = vmatmul.msk.f32.gmra.mxu0 %vm1034_vm0, %v54_v38 }
  0x4a   :  { %518 = vmatmul.msk.f32.gmra.mxu1 %vm1034_vm0, %v54_v38 }
  0x51   :  { %499 = vmatmul.msk.f32.gmra.mxu0 %vm1034_vm0, %v55_v39 }
  0x52   :  { %519 = vmatmul.msk.f32.gmra.mxu1 %vm1034_vm0, %v55_v39 }
  0x59   :  { %500 = vmatmul.msk.f32.gmra.mxu0 %vm1034_vm0, %v56_v40 }
  0x5a   :  { %520 = vmatmul.msk.f32.gmra.mxu1 %vm1034_vm0, %v56_v40 }
  0x7f   :  { %v69_v41 = vpop.permute.xlu1 %68 }
  0x83   :  { %v79_v47 = vpop.permute.xlu0 %78 }
  0x87   :  { %v64_v42 = vpop.permute.xlu1 %63 }
  0x8b   :  { %v74_v57 = vpop.permute.xlu0 %73 }
  0xbe   :  { %v207_v43 = vpop.f32.mrf.mxu0 }
  0xbf   :  { %v236_v44 = vpop.f32.mrf.mxu1  ;;  %v786_v45 = vadd.f32 %v207_v43, %v64_v42 }
  0xc0   :  { %v789_v48 = vadd.f32 %v236_v44, %v64_v42 }
  0xc1   :  { %v521_v46 = vmul.f32 -1.442695, %v786_v45 }
  0xc2   :  { %v522_v51 = vmul.f32 -1.442695, %v789_v48 }
  0xc3   :  { %536 = vpow2.f32 %v521_v46 }
  0xc4   :  { %538 = vpow2.f32 %v522_v51 }
  0xc6   :  { %v210_v49 = vpop.f32.mrf.mxu0 }
  0xc7   :  { %v239_v50 = vpop.f32.mrf.mxu1  ;;  %v792_v52 = vadd.f32 %v210_v49, %v69_v41 }
  0xc8   :  { %v794_v53 = vadd.f32 %v239_v50, %v69_v41 }
  0xc9   :  { %v523_v54 = vmul.f32 -1.442695, %v792_v52  ;;  %v537_v55 = vpop.eup %536 }
  0xca   :  { %v524_v56 = vmul.f32 -1.442695, %v794_v53  ;;  %v798_v58 = vadd.f32 1.0, %v537_v55  ;;  %v539_v63 = vpop.eup %538 }
  0xcb   :  { %540 = vpow2.f32 %v523_v54  ;;  %v807_v4 = vadd.f32 1.0, %v539_v63 }
  0xcc   :  { %542 = vpow2.f32 %v524_v56  ;;  %vm285_vm1 = vweird.f32 %v798_v58  ;;  %v291_v25 = vand.u32 2147483648, %v798_v58  ;;  %v289_v33 = vand.u32 2147483647, %v798_v58 }
  0xcd   :  { %544 = vrcp.f32 %v798_v58  ;;  %v304_v34 = vand.u32 2147483647, %v807_v4  ;;  %v306_v35 = vand.u32 2147483648, %v807_v4 }
  0xce   :  { %v213_v59 = vpop.f32.mrf.mxu0  ;;  %v868_v42 = vor.u32 1.1754944e-38, %v291_v25  ;;  %vm937_vm15 = vcmp.eq.f32.partialorder %v289_v33, 8.507059e+37 }
  0xcf   :  { %v242_v60 = vpop.f32.mrf.mxu1  ;;  %v800_v61 = vadd.f32 %v213_v59, %v74_v57 }
  0xd0   :  { %v802_v62 = vadd.f32 %v242_v60, %v74_v57 }
  0xd1   :  { %v525_v0 = vmul.f32 -1.442695, %v800_v61  ;;  %v541_v2 = vpop.eup %540 }
  0xd2   :  { %v526_v1 = vmul.f32 -1.442695, %v802_v62  ;;  %v543_v3 = vpop.eup %542  ;;  %v809_v5 = vadd.f32 1.0, %v541_v2 }
  0xd3   :  { %546 = vpow2.f32 %v525_v0  ;;  %v811_v6 = vadd.f32 1.0, %v543_v3  ;;  %v813_v9 = vpop.eup %544 }
  0xd4   :  { %548 = vpow2.f32 %v526_v1  ;;  %v281_v16 = vmul.f32 %v813_v9, %v798_v58  ;;  %v321_v38 = vand.u32 2147483648, %v809_v5  ;;  %vm286_vm2 = vweird.f32 %v813_v9 }
  0xd5   :  { %550 = vrcp.f32 %v807_v4  ;;  %vm315_vm3 = vweird.f32 %v809_v5  ;;  %v319_v50 = vand.u32 2147483647, %v809_v5  ;;  %v334_v56 = vand.u32 2147483647, %v811_v6  ;;  %vm889_vm5 = vmor %vm285_vm1, %vm286_vm2 }
  0xd6   :  { %v216_v7 = vpop.f32.mrf.mxu0  ;;  %552 = vrcp.f32 %v809_v5  ;;  %v282_v20 = vsub.f32 1.0, %v281_v16  ;;  %v878_v54 = vor.u32 1.1754944e-38, %v321_v38  ;;  %v336_v60 = vand.u32 2147483648, %v811_v6 }
  0xd7   :  { %v245_v8 = vpop.f32.mrf.mxu1  ;;  %v815_v10 = vadd.f32 %v216_v7, %v79_v47  ;;  %554 = vrcp.f32 %v811_v6  ;;  %vm919_vm14 = vcmp.eq.f32.partialorder %v319_v50, 8.507059e+37 }
  0xd8   :  { %v817_v11 = vadd.f32 %v245_v8, %v79_v47  ;;  %v283_v29 = vmul.f32 %v813_v9, %v282_v20  ;;  %v337_v7 = vor.u32 1.1754944e-38, %v336_v60 }
  0xd9   :  { %v547_v12 = vpop.eup %546  ;;  %v527_v13 = vmul.f32 -1.442695, %v815_v10 }
  0xda   :  { %v528_v14 = vmul.f32 -1.442695, %v817_v11  ;;  %v824_v15 = vadd.f32 1.0, %v547_v12  ;;  %v549_v17 = vpop.eup %548  ;;  %v872_v44 = vadd.f32 %v813_v9, %v283_v29 }
  0xdb   :  { %556 = vpow2.f32 %v527_v13  ;;  %v829_v18 = vadd.f32 1.0, %v549_v17  ;;  %v831_v19 = vpop.eup %550 }
  0xdc   :  { %558 = vrcp.f32 %v824_v15  ;;  %v834_v21 = vpop.eup %552  ;;  %v296_v30 = vmul.f32 %v831_v19, %v807_v4  ;;  %v349_v47 = vand.u32 2147483647, %v824_v15  ;;  %v351_v51 = vand.u32 2147483648, %v824_v15 }
  0xdd   :  { %560 = vpow2.f32 %v528_v14  ;;  %v836_v22 = vpop.eup %554  ;;  %v311_v28 = vmul.f32 %v834_v21, %v809_v5  ;;  %v364_v59 = vand.u32 2147483647, %v829_v18  ;;  %vm316_vm4 = vweird.f32 %v834_v21 }
  0xde   :  { %562 = vrcp.f32 %v829_v18  ;;  %v326_v39 = vmul.f32 %v836_v22, %v811_v6  ;;  %v297_v46 = vsub.f32 1.0, %v296_v30  ;;  %vm345_vm6 = vweird.f32 %v824_v15  ;;  %vm933_vm0 = vmor %vm315_vm3, %vm316_vm4 }
  0xdf   :  { %v312_v43 = vsub.f32 1.0, %v311_v28  ;;  %v288_v2 = vsel %vm889_vm5, %v813_v9, %v872_v44  ;;  %vm902_vm8 = vcmp.eq.f32.partialorder %v349_v47, 8.507059e+37  ;;  %vm360_vm9 = vweird.f32 %v829_v18 }
  0xe0   :  { %v327_v55 = vsub.f32 1.0, %v326_v39  ;;  %v298_v3 = vmul.f32 %v831_v19, %v297_v46  ;;  %v352_v13 = vor.u32 1.1754944e-38, %v351_v51  ;;  %v366_v14 = vand.u32 2147483648, %v829_v18 }
  0xe1   :  { %v557_v24 = vpop.eup %556  ;;  %v313_v1 = vmul.f32 %v834_v21, %v312_v43  ;;  %vm331_vm11 = vweird.f32 %v836_v22  ;;  %vm915_vm13 = vcmp.eq.f32.partialorder %v364_v59, 8.507059e+37  ;;  %vm1056_vm5 = vcmask 261120  }
  0xe2   :  { %v843_v26 = vpop.eup %558  ;;  %v845_v27 = vadd.f32 1.0, %v557_v24  ;;  %v328_v16 = vmul.f32 %v836_v22, %v327_v55  ;;  %v299_v51 = vadd.f32 %v831_v19, %v298_v3 }
  0xe3   :  { %v561_v31 = vpop.eup %560  ;;  %v341_v32 = vmul.f32 %v843_v26, %v824_v15  ;;  %vm346_vm12 = vweird.f32 %v843_v26  ;;  %v314_v30 = vadd.f32 %v834_v21, %v313_v1  ;;  %v367_v1 = vor.u32 1.1754944e-38, %v366_v14 }
  0xe4   :  { %v857_v36 = vpop.eup %562  ;;  %564 = vrcp.f32 %v845_v27  ;;  %v860_v37 = vadd.f32 1.0, %v561_v31  ;;  %v379_v28 = vand.u32 2147483647, %v845_v27  ;;  %v381_v29 = vand.u32 2147483648, %v845_v27  ;;  %vm948_vm7 = vmor %vm345_vm6, %vm346_vm12 }
  0xe5   :  { %v342_v40 = vsub.f32 1.0, %v341_v32  ;;  %v356_v41 = vmul.f32 %v857_v36, %v829_v18  ;;  %vm361_vm1 = vweird.f32 %v857_v36  ;;  %vm375_vm10 = vweird.f32 %v845_v27 }
  0xe6   :  { %566 = vrcp.f32 %v860_v37  ;;  %v396_v43 = vand.u32 2147483648, %v860_v37  ;;  %v329_v46 = vadd.f32 %v836_v22, %v328_v16  ;;  %vm960_vm4 = vmor %vm360_vm9, %vm361_vm1  ;;  %vm380_vm12 = vcmp.eq.f32.partialorder %v379_v28, 8.507059e+37 }
  0xe7   :  { %v357_v49 = vsub.f32 1.0, %v356_v41  ;;  %v343_v57 = vmul.f32 %v843_v26, %v342_v40  ;;  %v394_v41 = vand.u32 2147483647, %v860_v37  ;;  %v382_v15 = vor.u32 1.1754944e-38, %v381_v29 }
  0xe8   :  { %v318_v50 = vsel %vm933_vm0, %v834_v21, %v314_v30  ;;  %vm1051_vm9 = vweird.f32 %v811_v6  ;;  %v397_v21 = vor.u32 1.1754944e-38, %v396_v43 }
  0xe9   :  { %v358_v8 = vmul.f32 %v857_v36, %v357_v49  ;;  %v344_v23 = vadd.f32 %v843_v26, %v343_v57  ;;  %vm395_vm1 = vcmp.eq.f32.partialorder %v394_v41, 8.507059e+37  ;;  %v323_v16 = vsel %vm919_vm14, %v878_v54, %v318_v50 }
  0xea   :  { %v565_v0 = vpop.eup %564  ;;  %v293_v54 = vsel %vm937_vm15, %v868_v42, %v288_v2  ;;  %v402_v6 = vmul.f32 %v323_v16, %v792_v52  ;;  %vm305_vm14 = vcmp.eq.f32.partialorder %v304_v34, 8.507059e+37  ;;  %vm1057_vm15 = vmmov %vm1056_vm5  ;;  %v413_v52 = vpop.permute.xlu2 %412 }
  0xeb   :  { %v371_v58 = vmul.f32 %v565_v0, %v845_v27  ;;  %vm376_vm2 = vweird.f32 %v565_v0  ;;  %v359_v38 = vadd.f32 %v857_v36, %v358_v8  ;;  %v348_v27 = vsel %vm948_vm7, %v843_v26, %v344_v23 }
  0xec   :  { %v567_v12 = vpop.eup %566  ;;  %vm377_vm6 = vmor %vm375_vm10, %vm376_vm2  ;;  %vm390_vm7 = vweird.f32 %v860_v37  ;;  %v400_v44 = vmul.f32 %v293_v54, %v786_v45 }
  0xed   :  { %v372_v17 = vsub.f32 1.0, %v371_v58  ;;  %v386_v20 = vmul.f32 %v567_v12, %v860_v37  ;;  %vm391_vm3 = vweird.f32 %v567_v12  ;;  %v363_v18 = vsel %vm960_vm4, %v857_v36, %v359_v38  ;;  %vm977_vm10 = vmor %vm1051_vm9, %vm331_vm11 }
  0xee   :  { %vm392_vm0 = vmor %vm390_vm7, %vm391_vm3  ;;  %v333_v36 = vsel %vm977_vm10, %v836_v22, %v329_v46  ;;  %v368_v8 = vsel %vm915_vm13, %v367_v1, %v363_v18  ;;  %vm1055_vm11 = vweird.f32 %v807_v4  ;;  %vm335_vm13 = vcmp.eq.f32.partialorder %v334_v56, 8.507059e+37 }
  0xef   :  { %v373_v31 = vmul.f32 %v565_v0, %v372_v17  ;;  %v387_v32 = vsub.f32 1.0, %v386_v20  ;;  %vm461_vm3 = vcmask 1041408  }
  0xf1   :  { %v374_v33 = vadd.f32 %v565_v0, %v373_v31  ;;  %v388_v47 = vmul.f32 %v567_v12, %v387_v32 }
  0xf3   :  { %v378_v55 = vsel %vm377_vm6, %v565_v0, %v374_v33  ;;  %v389_v26 = vadd.f32 %v567_v12, %v388_v47  ;;  %v353_v0 = vsel %vm902_vm8, %v352_v13, %v348_v27  ;;  %vm1054_vm8 = vweird.f32 %v831_v19 }
  0xf4   :  { %v383_v59 = vsel %vm380_vm12, %v382_v15, %v378_v55  ;;  %vm302_vm2 = vmor %vm1055_vm11, %vm1054_vm8  ;;  %v404_v22 = vmul.f32 %v353_v0, %v800_v61  ;;  %v338_v13 = vsel %vm335_vm13, %v337_v7, %v333_v36  ;;  %v405_v61 = vmul.f32 %v368_v8, %v802_v62 }
  0xf5   :  { %v406_v37 = vmul.f32 %v383_v59, %v815_v10  ;;  %v393_v3 = vsel %vm392_vm0, %v567_v12, %v389_v26  ;;  %v303_v12 = vsel %vm302_vm2, %v831_v19, %v299_v51  ;;  %v403_v9 = vmul.f32 %v338_v13, %v794_v53 }
  0xf6   :  { %v398_v58 = vsel %vm395_vm1, %v397_v21, %v393_v3 }
  0xf7   :  { %430 = vmatpush.msra.mxu2 %v406_v37  ;;  %v407_v10 = vmul.f32 %v398_v58, %v817_v11  ;;  %v307_v11 = vor.u32 1.1754944e-38, %v306_v35  ;;  %v408_v35 = vld [vmem:[%s1031_s3] sm:$0x3] }
  0xf9   :  { %450 = vmatpush.msra.mxu3 %v407_v10  ;;  %431 = vmatpush.msra.mxu2 %v404_v22  ;;  %v308_v19 = vsel %vm305_vm14, %v307_v11, %v303_v12 }
  0xfa   :  { %v401_v62 = vmul.f32 %v308_v19, %v789_v48 }
  0xfb   :  { %451 = vmatpush.msra.mxu3 %v405_v61  ;;  %432 = vmatpush.msra.mxu2 %v402_v6 }
  0xfd   :  { %452 = vmatpush.msra.mxu3 %v403_v9  ;;  %433 = vmatpush.msra.mxu2 %v400_v44 }
  0xfe   :  { %529 = vmatmul.msk.f32.vlgmr.msra.gmra.mxu2 %vm1056_vm5, %v408_v35 }
  0xff   :  { %453 = vmatpush.msra.mxu3 %v401_v62 }
 0x100   :  { %530 = vmatmul.msk.f32.vlgmr.msra.gmra.mxu3 %vm1057_vm15, %v408_v35 }
 0x181   :  { %v435_v4 = vpop.f32.mrf.mxu2 }
 0x182   :  { %v436_v45 = vadd.f32 %v435_v4, %v413_v52 }
 0x183   :  { %v455_v34 = vpop.f32.mrf.mxu3 }
 0x184   :  { %v456_v42 = vadd.f32 %v455_v34, %v413_v52 }
 0x186   :  { %v460_v53 = vrot.slane %v456_v42, 6 }
 0x188   :  { %v462_v48 = vsel %vm461_vm3, %v436_v45, %v460_v53 }
 0x189   :  { %464 = vst [vmem:[#allocation2] sm:$0xf] %v462_v48 }
 0x18a   :  { %475 = dma.vmem_to_hbm [thread:$0]  %s471_s24, 64, %s473_s27, [#allocation3]  }
 0x18b   :  { %592 = dma.done.wait [#allocation3], 64  }
 0x18c   :  { %593 = vsyncadd [#allocation3], 4294967232 }
 0x18d   :  { %480 = vsyncpa [#allocation3], 1 }

// kernel: tpu_custom_call.1
= control target key start
LH: loop header
LB: loop body
LE: loop exit
PB: predicated region body
PF: predicated region fallthrough
CT: control target
= control target key end

     0   :  { %vm1034_vm0 = vcmask 261120   ;;  %s1028_s0 = inlined_call_operand.vmem [shape: f32[256,32], index: 0, kind: input, shape index: {}]   ;;  %s1029_s1 = inlined_call_operand.vmem [shape: f32[32,32], index: 1, kind: input, shape index: {}]   ;;  %s1030_s2 = inlined_call_operand.vmem [shape: f32[32,1], index: 2, kind: input, shape index: {}]   ;;  %s1031_s3 = inlined_call_operand.vmem [shape: f32[2,32], index: 3, kind: input, shape index: {}]   ;;  %s1032_s4 = inlined_call_operand.vmem [shape: f32[2,1], index: 4, kind: input, shape index: {}]   ;;  %s1033_s5 = inlined_call_operand.hbm [shape: f32[2,256], index: 5, kind: output, shape index: {}]  }
   0x1   :  { %v36_v0 = vld [vmem:[%s1028_s0 + $0x78] sm:$0xff]  ;;  %v35_v2 = vld [vmem:[%s1028_s0 + $0x70] sm:$0xff]  ;;  %v34_v4 = vld [vmem:[%s1028_s0 + $0x68] sm:$0xff] }
   0x2   :  { %v52_v1 = vld [vmem:[%s1028_s0 + $0xf8] sm:$0xff]  ;;  %481 = vmatpush.xpose.msk.msra.mxu0 %vm1034_vm0, %v36_v0  ;;  %v51_v3 = vld [vmem:[%s1028_s0 + $0xf0] sm:$0xff]  ;;  %v50_v5 = vld [vmem:[%s1028_s0 + $0xe8] sm:$0xff] }
   0x3   :  { %501 = vmatpush.xpose.msk.msra.mxu1 %vm1034_vm0, %v52_v1 }
   0x6   :  { %482 = vmatpush.xpose.msk.msra.mxu0 %vm1034_vm0, %v35_v2 }
   0x7   :  { %502 = vmatpush.xpose.msk.msra.mxu1 %vm1034_vm0, %v51_v3 }
   0x8   :  { %10 = vsyncpa [#allocation3], 0  ;;  %v33_v6 = vld [vmem:[%s1028_s0 + $0x60] sm:$0xff]  ;;  %v32_v8 = vld [vmem:[%s1028_s0 + $0x58] sm:$0xff]  ;;  %v594_v21 = vmov 0   ;;  %s595_s23 = smov [#allocation2]  }
   0x9   :  { %v49_v7 = vld [vmem:[%s1028_s0 + $0xe0] sm:$0xff]  ;;  %v48_v9 = vld [vmem:[%s1028_s0 + $0xd8] sm:$0xff]  ;;  %v31_v10 = vld [vmem:[%s1028_s0 + $0x50] sm:$0xff]  ;;  %534 = vset.pattern.permute.xlu1 %v594_v21  ;;  %533 = vset.pattern.permute.xlu0 %v594_v21  ;;  %s470_s24 = sshll.u32 %s595_s23, 4  ;;  %s472_s27 = sshll.u32 %s1033_s5, 4  ;;  %s471_s24 = int_to_ptr.vmem [resolvable:$true] %s470_s24  ;;  %s473_s27 = int_to_ptr.hbm [resolvable:$true] %s472_s27 }
   0xa   :  { %483 = vmatpush.xpose.msk.msra.mxu0 %vm1034_vm0, %v34_v4  ;;  %v47_v11 = vld [vmem:[%s1028_s0 + $0xd0] sm:$0xff]  ;;  %v30_v12 = vld [vmem:[%s1028_s0 + $0x48] sm:$0xff]  ;;  %v29_v14 = vld [vmem:[%s1028_s0 + $0x40] sm:$0xff]  ;;  %535 = vset.pattern.permute.xlu2 %v594_v21 }
   0xb   :  { %503 = vmatpush.xpose.msk.msra.mxu1 %vm1034_vm0, %v50_v5  ;;  %v46_v13 = vld [vmem:[%s1028_s0 + $0xc8] sm:$0xff]  ;;  %v45_v15 = vld [vmem:[%s1028_s0 + $0xc0] sm:$0xff]  ;;  %v28_v16 = vld [vmem:[%s1028_s0 + $0x38] sm:$0xff] }
   0xc   :  { %v44_v17 = vld [vmem:[%s1028_s0 + $0xb8] sm:$0xff]  ;;  %v58_v18 = vld [vmem:[%s1030_s2 + $0x8] sm:$0xff]  ;;  %v27_v19 = vld [vmem:[%s1028_s0 + $0x30] sm:$0xff] }
   0xd   :  { %v43_v20 = vld [vmem:[%s1028_s0 + $0xb0] sm:$0xff]  ;;  %68 = vperm.xlu1 %534, %v58_v18   ;;  %v26_v22 = vld [vmem:[%s1028_s0 + $0x28] sm:$0xff]  ;;  %v57_v24 = vld [vmem:[%s1030_s2] sm:$0xff] }
   0xe   :  { %484 = vmatpush.xpose.msk.msra.mxu0 %vm1034_vm0, %v33_v6  ;;  %v42_v23 = vld [vmem:[%s1028_s0 + $0xa8] sm:$0xff]  ;;  %v25_v25 = vld [vmem:[%s1028_s0 + $0x20] sm:$0xff]  ;;  %v24_v27 = vld [vmem:[%s1028_s0 + $0x18] sm:$0xff] }
   0xf   :  { %504 = vmatpush.xpose.msk.msra.mxu1 %vm1034_vm0, %v49_v7  ;;  %v41_v26 = vld [vmem:[%s1028_s0 + $0xa0] sm:$0xff]  ;;  %v40_v28 = vld [vmem:[%s1028_s0 + $0x98] sm:$0xff]  ;;  %v23_v30 = vld [vmem:[%s1028_s0 + $0x10] sm:$0xff] }
  0x10   :  { %v60_v29 = vld [vmem:[%s1030_s2 + $0x18] sm:$0xff]  ;;  %v39_v31 = vld [vmem:[%s1028_s0 + $0x90] sm:$0xff]  ;;  %v22_v32 = vld [vmem:[%s1028_s0 + $0x8] sm:$0xff] }
  0x11   :  { %78 = vperm.xlu0 %533, %v60_v29   ;;  %v38_v33 = vld [vmem:[%s1028_s0 + $0x88] sm:$0xff]  ;;  %v59_v34 = vld [vmem:[%s1030_s2 + $0x10] sm:$0xff]  ;;  %v21_v35 = vld [vmem:[%s1028_s0] sm:$0xff] }
  0x12   :  { %485 = vmatpush.xpose.msk.msra.mxu0 %vm1034_vm0, %v32_v8  ;;  %v37_v36 = vld [vmem:[%s1028_s0 + $0x80] sm:$0xff]  ;;  %v54_v38 = vld [vmem:[%s1029_s1 + $0x8] sm:$0xff]  ;;  %v55_v39 = vld [vmem:[%s1029_s1 + $0x10] sm:$0xff] }
  0x13   :  { %505 = vmatpush.xpose.msk.msra.mxu1 %vm1034_vm0, %v48_v9  ;;  %v53_v37 = vld [vmem:[%s1029_s1] sm:$0xff]  ;;  %v56_v40 = vld [vmem:[%s1029_s1 + $0x18] sm:$0xff] }
  0x15   :  { %63 = vperm.xlu1 %534, %v57_v24  }
  0x16   :  { %486 = vmatpush.xpose.msk.msra.mxu0 %vm1034_vm0, %v31_v10 }
  0x17   :  { %506 = vmatpush.xpose.msk.msra.mxu1 %vm1034_vm0, %v47_v11 }
  0x19   :  { %73 = vperm.xlu0 %533, %v59_v34  }
  0x1a   :  { %487 = vmatpush.xpose.msk.msra.mxu0 %vm1034_vm0, %v30_v12 }
  0x1b   :  { %507 = vmatpush.xpose.msk.msra.mxu1 %vm1034_vm0, %v46_v13 }
  0x1e   :  { %488 = vmatpush.xpose.msk.msra.mxu0 %vm1034_vm0, %v29_v14 }
  0x1f   :  { %508 = vmatpush.xpose.msk.msra.mxu1 %vm1034_vm0, %v45_v15 }
  0x22   :  { %489 = vmatpush.xpose.msk.msra.mxu0 %vm1034_vm0, %v28_v16 }
  0x23   :  { %509 = vmatpush.xpose.msk.msra.mxu1 %vm1034_vm0, %v44_v17 }
  0x26   :  { %490 = vmatpush.xpose.msk.msra.mxu0 %vm1034_vm0, %v27_v19 }
  0x27   :  { %510 = vmatpush.xpose.msk.msra.mxu1 %vm1034_vm0, %v43_v20 }
  0x2a   :  { %491 = vmatpush.xpose.msk.msra.mxu0 %vm1034_vm0, %v26_v22 }
  0x2b   :  { %511 = vmatpush.xpose.msk.msra.mxu1 %vm1034_vm0, %v42_v23  ;;  %v409_v23 = vld [vmem:[%s1032_s4] sm:$0x3] }
  0x2c   :  { %412 = vperm.xlu2 %535, %v409_v23  }
  0x2e   :  { %492 = vmatpush.xpose.msk.msra.mxu0 %vm1034_vm0, %v25_v25 }
  0x2f   :  { %512 = vmatpush.xpose.msk.msra.mxu1 %vm1034_vm0, %v41_v26 }
  0x32   :  { %493 = vmatpush.xpose.msk.msra.mxu0 %vm1034_vm0, %v24_v27 }
  0x33   :  { %513 = vmatpush.xpose.msk.msra.mxu1 %vm1034_vm0, %v40_v28 }
  0x36   :  { %494 = vmatpush.xpose.msk.msra.mxu0 %vm1034_vm0, %v23_v30 }
  0x37   :  { %514 = vmatpush.xpose.msk.msra.mxu1 %vm1034_vm0, %v39_v31 }
  0x3a   :  { %495 = vmatpush.xpose.msk.msra.mxu0 %vm1034_vm0, %v22_v32 }
  0x3b   :  { %515 = vmatpush.xpose.msk.msra.mxu1 %vm1034_vm0, %v38_v33 }
  0x3e   :  { %496 = vmatpush.xpose.msk.msra.mxu0 %vm1034_vm0, %v21_v35 }
  0x3f   :  { %516 = vmatpush.xpose.msk.msra.mxu1 %vm1034_vm0, %v37_v36 }
  0x41   :  { %497 = vmatmul.msk.f32.vlgmr.msra.gmra.mxu0 %vm1034_vm0, %v53_v37 }
  0x42   :  { %517 = vmatmul.msk.f32.vlgmr.msra.gmra.mxu1 %vm1034_vm0, %v53_v37 }
  0x49   :  { %498 = vmatmul.msk.f32.gmra.mxu0 %vm1034_vm0, %v54_v38 }
  0x4a   :  { %518 = vmatmul.msk.f32.gmra.mxu1 %vm1034_vm0, %v54_v38 }
  0x51   :  { %499 = vmatmul.msk.f32.gmra.mxu0 %vm1034_vm0, %v55_v39 }
  0x52   :  { %519 = vmatmul.msk.f32.gmra.mxu1 %vm1034_vm0, %v55_v39 }
  0x59   :  { %500 = vmatmul.msk.f32.gmra.mxu0 %vm1034_vm0, %v56_v40 }
  0x5a   :  { %520 = vmatmul.msk.f32.gmra.mxu1 %vm1034_vm0, %v56_v40 }
  0x7f   :  { %v69_v41 = vpop.permute.xlu1 %68 }
  0x83   :  { %v79_v47 = vpop.permute.xlu0 %78 }
  0x87   :  { %v64_v42 = vpop.permute.xlu1 %63 }
  0x8b   :  { %v74_v57 = vpop.permute.xlu0 %73 }
  0xbe   :  { %v207_v43 = vpop.f32.mrf.mxu0 }
  0xbf   :  { %v236_v44 = vpop.f32.mrf.mxu1  ;;  %v786_v45 = vadd.f32 %v207_v43, %v64_v42 }
  0xc0   :  { %v789_v48 = vadd.f32 %v236_v44, %v64_v42 }
  0xc1   :  { %v521_v46 = vmul.f32 -1.442695, %v786_v45 }
  0xc2   :  { %v522_v51 = vmul.f32 -1.442695, %v789_v48 }
  0xc3   :  { %536 = vpow2.f32 %v521_v46 }
  0xc4   :  { %538 = vpow2.f32 %v522_v51 }
  0xc6   :  { %v210_v49 = vpop.f32.mrf.mxu0 }
  0xc7   :  { %v239_v50 = vpop.f32.mrf.mxu1  ;;  %v792_v52 = vadd.f32 %v210_v49, %v69_v41 }
  0xc8   :  { %v794_v53 = vadd.f32 %v239_v50, %v69_v41 }
  0xc9   :  { %v523_v54 = vmul.f32 -1.442695, %v792_v52  ;;  %v537_v55 = vpop.eup %536 }
  0xca   :  { %v524_v56 = vmul.f32 -1.442695, %v794_v53  ;;  %v798_v58 = vadd.f32 1.0, %v537_v55  ;;  %v539_v63 = vpop.eup %538 }
  0xcb   :  { %540 = vpow2.f32 %v523_v54  ;;  %v807_v4 = vadd.f32 1.0, %v539_v63 }
  0xcc   :  { %542 = vpow2.f32 %v524_v56  ;;  %vm285_vm1 = vweird.f32 %v798_v58  ;;  %v291_v25 = vand.u32 2147483648, %v798_v58  ;;  %v289_v33 = vand.u32 2147483647, %v798_v58 }
  0xcd   :  { %544 = vrcp.f32 %v798_v58  ;;  %v304_v34 = vand.u32 2147483647, %v807_v4  ;;  %v306_v35 = vand.u32 2147483648, %v807_v4 }
  0xce   :  { %v213_v59 = vpop.f32.mrf.mxu0  ;;  %v868_v42 = vor.u32 1.1754944e-38, %v291_v25  ;;  %vm937_vm15 = vcmp.eq.f32.partialorder %v289_v33, 8.507059e+37 }
  0xcf   :  { %v242_v60 = vpop.f32.mrf.mxu1  ;;  %v800_v61 = vadd.f32 %v213_v59, %v74_v57 }
  0xd0   :  { %v802_v62 = vadd.f32 %v242_v60, %v74_v57 }
  0xd1   :  { %v525_v0 = vmul.f32 -1.442695, %v800_v61  ;;  %v541_v2 = vpop.eup %540 }
  0xd2   :  { %v526_v1 = vmul.f32 -1.442695, %v802_v62  ;;  %v543_v3 = vpop.eup %542  ;;  %v809_v5 = vadd.f32 1.0, %v541_v2 }
  0xd3   :  { %546 = vpow2.f32 %v525_v0  ;;  %v811_v6 = vadd.f32 1.0, %v543_v3  ;;  %v813_v9 = vpop.eup %544 }
  0xd4   :  { %548 = vpow2.f32 %v526_v1  ;;  %v281_v16 = vmul.f32 %v813_v9, %v798_v58  ;;  %v321_v38 = vand.u32 2147483648, %v809_v5  ;;  %vm286_vm2 = vweird.f32 %v813_v9 }
  0xd5   :  { %550 = vrcp.f32 %v807_v4  ;;  %vm315_vm3 = vweird.f32 %v809_v5  ;;  %v319_v50 = vand.u32 2147483647, %v809_v5  ;;  %v334_v56 = vand.u32 2147483647, %v811_v6  ;;  %vm889_vm5 = vmor %vm285_vm1, %vm286_vm2 }
  0xd6   :  { %v216_v7 = vpop.f32.mrf.mxu0  ;;  %552 = vrcp.f32 %v809_v5  ;;  %v282_v20 = vsub.f32 1.0, %v281_v16  ;;  %v878_v54 = vor.u32 1.1754944e-38, %v321_v38  ;;  %v336_v60 = vand.u32 2147483648, %v811_v6 }
  0xd7   :  { %v245_v8 = vpop.f32.mrf.mxu1  ;;  %v815_v10 = vadd.f32 %v216_v7, %v79_v47  ;;  %554 = vrcp.f32 %v811_v6  ;;  %vm919_vm14 = vcmp.eq.f32.partialorder %v319_v50, 8.507059e+37 }
  0xd8   :  { %v817_v11 = vadd.f32 %v245_v8, %v79_v47  ;;  %v283_v29 = vmul.f32 %v813_v9, %v282_v20  ;;  %v337_v7 = vor.u32 1.1754944e-38, %v336_v60 }
  0xd9   :  { %v547_v12 = vpop.eup %546  ;;  %v527_v13 = vmul.f32 -1.442695, %v815_v10 }
  0xda   :  { %v528_v14 = vmul.f32 -1.442695, %v817_v11  ;;  %v824_v15 = vadd.f32 1.0, %v547_v12  ;;  %v549_v17 = vpop.eup %548  ;;  %v872_v44 = vadd.f32 %v813_v9, %v283_v29 }
  0xdb   :  { %556 = vpow2.f32 %v527_v13  ;;  %v829_v18 = vadd.f32 1.0, %v549_v17  ;;  %v831_v19 = vpop.eup %550 }
  0xdc   :  { %558 = vrcp.f32 %v824_v15  ;;  %v834_v21 = vpop.eup %552  ;;  %v296_v30 = vmul.f32 %v831_v19, %v807_v4  ;;  %v349_v47 = vand.u32 2147483647, %v824_v15  ;;  %v351_v51 = vand.u32 2147483648, %v824_v15 }
  0xdd   :  { %560 = vpow2.f32 %v528_v14  ;;  %v836_v22 = vpop.eup %554  ;;  %v311_v28 = vmul.f32 %v834_v21, %v809_v5  ;;  %v364_v59 = vand.u32 2147483647, %v829_v18  ;;  %vm316_vm4 = vweird.f32 %v834_v21 }
  0xde   :  { %562 = vrcp.f32 %v829_v18  ;;  %v326_v39 = vmul.f32 %v836_v22, %v811_v6  ;;  %v297_v46 = vsub.f32 1.0, %v296_v30  ;;  %vm345_vm6 = vweird.f32 %v824_v15  ;;  %vm933_vm0 = vmor %vm315_vm3, %vm316_vm4 }
  0xdf   :  { %v312_v43 = vsub.f32 1.0, %v311_v28  ;;  %v288_v2 = vsel %vm889_vm5, %v813_v9, %v872_v44  ;;  %vm902_vm8 = vcmp.eq.f32.partialorder %v349_v47, 8.507059e+37  ;;  %vm360_vm9 = vweird.f32 %v829_v18 }
  0xe0   :  { %v327_v55 = vsub.f32 1.0, %v326_v39  ;;  %v298_v3 = vmul.f32 %v831_v19, %v297_v46  ;;  %v352_v13 = vor.u32 1.1754944e-38, %v351_v51  ;;  %v366_v14 = vand.u32 2147483648, %v829_v18 }
  0xe1   :  { %v557_v24 = vpop.eup %556  ;;  %v313_v1 = vmul.f32 %v834_v21, %v312_v43  ;;  %vm331_vm11 = vweird.f32 %v836_v22  ;;  %vm915_vm13 = vcmp.eq.f32.partialorder %v364_v59, 8.507059e+37  ;;  %vm1056_vm5 = vcmask 261120  }
  0xe2   :  { %v843_v26 = vpop.eup %558  ;;  %v845_v27 = vadd.f32 1.0, %v557_v24  ;;  %v328_v16 = vmul.f32 %v836_v22, %v327_v55  ;;  %v299_v51 = vadd.f32 %v831_v19, %v298_v3 }
  0xe3   :  { %v561_v31 = vpop.eup %560  ;;  %v341_v32 = vmul.f32 %v843_v26, %v824_v15  ;;  %vm346_vm12 = vweird.f32 %v843_v26  ;;  %v314_v30 = vadd.f32 %v834_v21, %v313_v1  ;;  %v367_v1 = vor.u32 1.1754944e-38, %v366_v14 }
  0xe4   :  { %v857_v36 = vpop.eup %562  ;;  %564 = vrcp.f32 %v845_v27  ;;  %v860_v37 = vadd.f32 1.0, %v561_v31  ;;  %v379_v28 = vand.u32 2147483647, %v845_v27  ;;  %v381_v29 = vand.u32 2147483648, %v845_v27  ;;  %vm948_vm7 = vmor %vm345_vm6, %vm346_vm12 }
  0xe5   :  { %v342_v40 = vsub.f32 1.0, %v341_v32  ;;  %v356_v41 = vmul.f32 %v857_v36, %v829_v18  ;;  %vm361_vm1 = vweird.f32 %v857_v36  ;;  %vm375_vm10 = vweird.f32 %v845_v27 }
  0xe6   :  { %566 = vrcp.f32 %v860_v37  ;;  %v396_v43 = vand.u32 2147483648, %v860_v37  ;;  %v329_v46 = vadd.f32 %v836_v22, %v328_v16  ;;  %vm960_vm4 = vmor %vm360_vm9, %vm361_vm1  ;;  %vm380_vm12 = vcmp.eq.f32.partialorder %v379_v28, 8.507059e+37 }
  0xe7   :  { %v357_v49 = vsub.f32 1.0, %v356_v41  ;;  %v343_v57 = vmul.f32 %v843_v26, %v342_v40  ;;  %v394_v41 = vand.u32 2147483647, %v860_v37  ;;  %v382_v15 = vor.u32 1.1754944e-38, %v381_v29 }
  0xe8   :  { %v318_v50 = vsel %vm933_vm0, %v834_v21, %v314_v30  ;;  %vm1051_vm9 = vweird.f32 %v811_v6  ;;  %v397_v21 = vor.u32 1.1754944e-38, %v396_v43 }
  0xe9   :  { %v358_v8 = vmul.f32 %v857_v36, %v357_v49  ;;  %v344_v23 = vadd.f32 %v843_v26, %v343_v57  ;;  %vm395_vm1 = vcmp.eq.f32.partialorder %v394_v41, 8.507059e+37  ;;  %v323_v16 = vsel %vm919_vm14, %v878_v54, %v318_v50 }
  0xea   :  { %v565_v0 = vpop.eup %564  ;;  %v293_v54 = vsel %vm937_vm15, %v868_v42, %v288_v2  ;;  %v402_v6 = vmul.f32 %v323_v16, %v792_v52  ;;  %vm305_vm14 = vcmp.eq.f32.partialorder %v304_v34, 8.507059e+37  ;;  %vm1057_vm15 = vmmov %vm1056_vm5  ;;  %v413_v52 = vpop.permute.xlu2 %412 }
  0xeb   :  { %v371_v58 = vmul.f32 %v565_v0, %v845_v27  ;;  %vm376_vm2 = vweird.f32 %v565_v0  ;;  %v359_v38 = vadd.f32 %v857_v36, %v358_v8  ;;  %v348_v27 = vsel %vm948_vm7, %v843_v26, %v344_v23 }
  0xec   :  { %v567_v12 = vpop.eup %566  ;;  %vm377_vm6 = vmor %vm375_vm10, %vm376_vm2  ;;  %vm390_vm7 = vweird.f32 %v860_v37  ;;  %v400_v44 = vmul.f32 %v293_v54, %v786_v45 }
  0xed   :  { %v372_v17 = vsub.f32 1.0, %v371_v58  ;;  %v386_v20 = vmul.f32 %v567_v12, %v860_v37  ;;  %vm391_vm3 = vweird.f32 %v567_v12  ;;  %v363_v18 = vsel %vm960_vm4, %v857_v36, %v359_v38  ;;  %vm977_vm10 = vmor %vm1051_vm9, %vm331_vm11 }
  0xee   :  { %vm392_vm0 = vmor %vm390_vm7, %vm391_vm3  ;;  %v333_v36 = vsel %vm977_vm10, %v836_v22, %v329_v46  ;;  %v368_v8 = vsel %vm915_vm13, %v367_v1, %v363_v18  ;;  %vm1055_vm11 = vweird.f32 %v807_v4  ;;  %vm335_vm13 = vcmp.eq.f32.partialorder %v334_v56, 8.507059e+37 }
  0xef   :  { %v373_v31 = vmul.f32 %v565_v0, %v372_v17  ;;  %v387_v32 = vsub.f32 1.0, %v386_v20  ;;  %vm461_vm3 = vcmask 1041408  }
  0xf1   :  { %v374_v33 = vadd.f32 %v565_v0, %v373_v31  ;;  %v388_v47 = vmul.f32 %v567_v12, %v387_v32 }
  0xf3   :  { %v378_v55 = vsel %vm377_vm6, %v565_v0, %v374_v33  ;;  %v389_v26 = vadd.f32 %v567_v12, %v388_v47  ;;  %v353_v0 = vsel %vm902_vm8, %v352_v13, %v348_v27  ;;  %vm1054_vm8 = vweird.f32 %v831_v19 }
  0xf4   :  { %v383_v59 = vsel %vm380_vm12, %v382_v15, %v378_v55  ;;  %vm302_vm2 = vmor %vm1055_vm11, %vm1054_vm8  ;;  %v404_v22 = vmul.f32 %v353_v0, %v800_v61  ;;  %v338_v13 = vsel %vm335_vm13, %v337_v7, %v333_v36  ;;  %v405_v61 = vmul.f32 %v368_v8, %v802_v62 }
  0xf5   :  { %v406_v37 = vmul.f32 %v383_v59, %v815_v10  ;;  %v393_v3 = vsel %vm392_vm0, %v567_v12, %v389_v26  ;;  %v303_v12 = vsel %vm302_vm2, %v831_v19, %v299_v51  ;;  %v403_v9 = vmul.f32 %v338_v13, %v794_v53 }
  0xf6   :  { %v398_v58 = vsel %vm395_vm1, %v397_v21, %v393_v3 }
  0xf7   :  { %430 = vmatpush.msra.mxu2 %v406_v37  ;;  %v407_v10 = vmul.f32 %v398_v58, %v817_v11  ;;  %v307_v11 = vor.u32 1.1754944e-38, %v306_v35  ;;  %v408_v35 = vld [vmem:[%s1031_s3] sm:$0x3] }
  0xf9   :  { %450 = vmatpush.msra.mxu3 %v407_v10  ;;  %431 = vmatpush.msra.mxu2 %v404_v22  ;;  %v308_v19 = vsel %vm305_vm14, %v307_v11, %v303_v12 }
  0xfa   :  { %v401_v62 = vmul.f32 %v308_v19, %v789_v48 }
  0xfb   :  { %451 = vmatpush.msra.mxu3 %v405_v61  ;;  %432 = vmatpush.msra.mxu2 %v402_v6 }
  0xfd   :  { %452 = vmatpush.msra.mxu3 %v403_v9  ;;  %433 = vmatpush.msra.mxu2 %v400_v44 }
  0xfe   :  { %529 = vmatmul.msk.f32.vlgmr.msra.gmra.mxu2 %vm1056_vm5, %v408_v35 }
  0xff   :  { %453 = vmatpush.msra.mxu3 %v401_v62 }
 0x100   :  { %530 = vmatmul.msk.f32.vlgmr.msra.gmra.mxu3 %vm1057_vm15, %v408_v35 }
 0x181   :  { %v435_v4 = vpop.f32.mrf.mxu2 }
 0x182   :  { %v436_v45 = vadd.f32 %v435_v4, %v413_v52 }
 0x183   :  { %v455_v34 = vpop.f32.mrf.mxu3 }
 0x184   :  { %v456_v42 = vadd.f32 %v455_v34, %v413_v52 }
 0x186   :  { %v460_v53 = vrot.slane %v456_v42, 6 }
 0x188   :  { %v462_v48 = vsel %vm461_vm3, %v436_v45, %v460_v53 }
 0x189   :  { %464 = vst [vmem:[#allocation2] sm:$0xf] %v462_v48 }
 0x18a   :  { %475 = dma.vmem_to_hbm [thread:$0]  %s471_s24, 64, %s473_s27, [#allocation3]  }
 0x18b   :  { %592 = dma.done.wait [#allocation3], 64  }
 0x18c   :  { %593 = vsyncadd [#allocation3], 4294967232 }
 0x18d   :  { %480 = vsyncpa [#allocation3], 1 }

</bundles_post_ra>
